<compile_context>
chip_gen: v6e
topology: v6e:2x2x1
jax: 0.10.0
libtpu: 0.0.40
codegen_flags: <defaults>
</compile_context>

<pallas_src>
import functools

import jax
import jax.numpy as jnp
from jax.experimental import pallas as pl
from jax.experimental.pallas import tpu as pltpu


def _round_up(x, m):
    return ((x + m - 1) // m) * m


def _gat_kernel(h_ref, adj_ref, w_ref, asrc_ref, adst_ref, *rest,
                num_heads, head_dim, with_alpha):
    # h_ref    : (1, N, F_in)  bf16   node features of one sample
    # adj_ref  : (1, T, N)     int8   adjacency tile, adj[dst, src] != 0 => edge
    # w_ref    : (F_in, H*D)   bf16   fused, pre-transposed fc weights
    # asrc_ref : (H, H*D)      bf16   block-diagonal src-attention matrix
    # adst_ref : (H*D, H)      bf16   block-diagonal dst-attention matrix
    # out_ref  : (1, T, H*D)   f32    merged ('cat') outputs, lane-dense
    # alpha_ref: (1, H, T, N)  bf16   attention coefficients (only if with_alpha)
    # z_ref    : (N, H*D)      bf16   VMEM scratch, persists across dst tiles
    # fsrc_ref : (H, N)        f32    per-head a_src . z_j (all src nodes)
    # fdst_ref : (N, H)        f32    per-head a_dst . z_i (all dst nodes)
    if with_alpha:
        out_ref, alpha_ref, z_ref, fsrc_ref, fdst_ref = rest
    else:
        out_ref, z_ref, fsrc_ref, fdst_ref = rest
        alpha_ref = None

    t = pl.program_id(1)
    T = out_ref.shape[1]

    # Per-sample work (heads fused), done only on the first dst tile.
    @pl.when(t == 0)
    def _():
        z = jnp.dot(h_ref[0], w_ref[...], preferred_element_type=jnp.float32)
        z_bf = z.astype(jnp.bfloat16)
        z_ref[...] = z_bf                                        # (N, H*D)
        fsrc_ref[...] = jax.lax.dot_general(                     # (H, N)
            asrc_ref[...], z_bf,
            dimension_numbers=(((1,), (1,)), ((), ())),
            preferred_element_type=jnp.float32)
        fdst_ref[...] = jnp.dot(z_bf, adst_ref[...],             # (N, H)
                                preferred_element_type=jnp.float32)

    start = pl.multiple_of(t * T, T)
    mask = adj_ref[0] != 0                                       # (T, N), int8 compare
    neg_inf = jnp.float32(-1e30)

    outs = []
    for hh in range(num_heads):
        lo = hh * head_dim
        f_src = fsrc_ref[hh:hh + 1, :]                           # (1, N)
        f_dst = fdst_ref[pl.ds(start, T), hh:hh + 1]             # (T, 1)

        # e[i, j] = leaky_relu(a_dst.z_i + a_src.z_j), slope 0.01 (torch default)
        e = f_dst + f_src                                        # (T, N)
        e = jnp.where(e >= 0.0, e, 0.01 * e)
        e = jnp.where(mask, e, neg_inf)

        # masked softmax over source nodes; masked entries underflow to exactly 0
        # because e_max is finite (self-loop precondition).
        e_max = jnp.max(e, axis=-1, keepdims=True)
        p = jnp.exp(e - e_max)
        denom = jnp.sum(p, axis=-1, keepdims=True)
        inv = pl.reciprocal(denom, approx=True)                  # EUP slot
        inv = inv * (2.0 - denom * inv)                          # Newton -> full f32
        alpha = p * inv                                          # (T, N) f32

        # h_i = sum_j alpha[i, j] * z_j   (bf16 operands, f32 accumulation)
        out_h = jnp.dot(alpha.astype(jnp.bfloat16),
                        z_ref[:, lo:lo + head_dim],
                        preferred_element_type=jnp.float32)      # (T, D)
        outs.append(out_h)

        if alpha_ref is not None:
            alpha_ref[0, hh] = alpha.astype(alpha_ref.dtype)

    # One lane-dense (T, H*D) store per dst tile (instead of H narrow stores).
    out_ref[0] = jnp.concatenate(outs, axis=-1).astype(out_ref.dtype)


def _vmem_bytes(N, H, D, F_in, with_alpha, t):
    """Rough VMEM footprint (scratches + double-buffered tile blocks)."""
    HD = H * D
    fixed = (_round_up(N, 16) * _round_up(HD, 128) * 2            # z scratch (bf16)
             + _round_up(H, 8) * _round_up(N, 128) * 4            # fsrc scratch
             + _round_up(N, 8) * _round_up(H, 128) * 4            # fdst scratch
             + 2 * _round_up(N, 16) * _round_up(F_in, 128) * 2    # h blocks (bf16)
             + _round_up(F_in, 16) * _round_up(HD, 128) * 2       # w
             + 3 * _round_up(HD, 16) * 128 * 2)                   # attn mats (approx)
    tile = (2 * _round_up(t, 32) * _round_up(N, 128)              # adj int8
            + 2 * _round_up(t, 8) * _round_up(HD, 128) * 4)       # out f32
    if with_alpha:
        tile += 2 * H * _round_up(t, 16) * _round_up(N, 128) * 2  # alpha bf16
    return fixed + tile


def _pick_t_dst(N, H, D, F_in, with_alpha, budget):
    """Largest dst tile (32-aligned divisor of N) whose VMEM footprint fits."""
    if _vmem_bytes(N, H, D, F_in, with_alpha, N) <= budget:
        return N
    best = None
    for cand in range(32, N, 32):
        if N % cand == 0 and _vmem_bytes(N, H, D, F_in, with_alpha, cand) <= budget:
            best = cand                       # keep the largest that fits
    if best is None:
        for cand in range(32, N, 32):         # smallest aligned divisor (may exceed budget)
            if N % cand == 0:
                return cand
        return N
    return best


def gat_forward(h, adj, w, a_attn, *, t_dst=None, return_attention=True,
                vmem_budget_bytes=40 * 1024 * 1024):
    """Dense GAT forward (MultiHeadGATLayer, merge='cat').

    h      : [B, N, F_in]  node features
    adj    : [B, N, N]     adjacency, adj[b, dst, src] != 0 => edge src->dst.
                           Caller should include self-loops (no zero in-degree).
    w      : [H, D, F_in]  per-head fc weights (nn.Linear layout [out, in], no bias)
    a_attn : [H, 2*D]      per-head attn_fc weights (src half first, dst half second)

    Returns (out [B, N, H*D] f32, alpha [B, H, N, N] bf16 or None).
    """
    B, N, F_in = h.shape
    H, D, _ = w.shape
    HD = H * D

    # Host-side layout plumbing (done once, outside the kernel).
    w_all = jnp.transpose(w, (2, 0, 1)).reshape(F_in, HD).astype(jnp.bfloat16)
    eye_h = jnp.eye(H, dtype=jnp.float32)
    a_src = a_attn[:, :D].astype(jnp.float32)
    a_dst = a_attn[:, D:].astype(jnp.float32)
    # Block-diagonal attention matrices: f_src / f_dst for ALL heads come from
    # two MXU matmuls executed once per sample, not per dst tile.
    asrc_mat = jnp.einsum("gh,hd->ghd", eye_h, a_src).reshape(H, HD).astype(jnp.bfloat16)
    adst_mat = jnp.einsum("hd,hg->hdg", a_dst, eye_h).reshape(HD, H).astype(jnp.bfloat16)
    adj_i8 = (adj != 0).astype(jnp.int8)                  # 4x less HBM/VMEM than f32
    h_bf = h.astype(jnp.bfloat16)

    # Destination-node tiling under an explicit VMEM budget.
    if t_dst is None:
        t_dst = _pick_t_dst(N, H, D, F_in, return_attention, vmem_budget_bytes)
    else:
        if N % t_dst != 0 or (t_dst != N and t_dst % 32 != 0):
            raise ValueError("t_dst must divide N and be a multiple of 32 "
                             "(int8 sublane packing), or equal N")
    n_t = N // t_dst
    est_bytes = _vmem_bytes(N, H, D, F_in, return_attention, t_dst)
    vmem_limit = int(min(max(est_bytes * 3 // 2, 32 << 20), 96 << 20))

    kernel = functools.partial(_gat_kernel, num_heads=H, head_dim=D,
                               with_alpha=return_attention)

    out_shape = [jax.ShapeDtypeStruct((B, N, HD), jnp.float32)]
    out_specs = [pl.BlockSpec((1, t_dst, HD), lambda b, t: (b, t, 0))]
    if return_attention:
        out_shape.append(jax.ShapeDtypeStruct((B, H, N, N), jnp.bfloat16))
        out_specs.append(pl.BlockSpec((1, H, t_dst, N), lambda b, t: (b, 0, t, 0)))

    res = pl.pallas_call(
        kernel,
        out_shape=tuple(out_shape),
        grid=(B, n_t),
        in_specs=[
            pl.BlockSpec((1, N, F_in), lambda b, t: (b, 0, 0)),
            pl.BlockSpec((1, t_dst, N), lambda b, t: (b, t, 0)),
            pl.BlockSpec((F_in, HD), lambda b, t: (0, 0)),
            pl.BlockSpec((H, HD), lambda b, t: (0, 0)),
            pl.BlockSpec((HD, H), lambda b, t: (0, 0)),
        ],
        out_specs=tuple(out_specs),
        scratch_shapes=[
            pltpu.VMEM((N, HD), jnp.bfloat16),   # z (all heads, bf16)
            pltpu.VMEM((H, N), jnp.float32),     # f_src per head
            pltpu.VMEM((N, H), jnp.float32),     # f_dst per head
        ],
        compiler_params=pltpu.CompilerParams(
            dimension_semantics=("parallel", "arbitrary"),
            vmem_limit_bytes=vmem_limit),
    )(h_bf, adj_i8, w_all, asrc_mat, adst_mat)

    if return_attention:
        out, alphas = res
        return out, alphas
    out = res[0] if isinstance(res, (tuple, list)) else res
    return out, None


def gat_reference(h, adj, w, a_attn):
    """Pure-JAX reference mirroring the kernel's bf16 operand quantization."""
    B, N, _ = h.shape
    H, D, _ = w.shape
    f32 = jnp.float32
    hb = h.astype(jnp.bfloat16).astype(f32)
    wb = w.astype(jnp.bfloat16).astype(f32)
    ab = a_attn.astype(jnp.bfloat16).astype(f32)
    z = jnp.einsum("bnf,hdf->bhnd", hb, wb)
    z = z.astype(jnp.bfloat16).astype(f32)          # z held as bf16 in the kernel
    a_src = ab[:, :D]
    a_dst = ab[:, D:]
    f_src = jnp.einsum("bhnd,hd->bhn", z, a_src)
    f_dst = jnp.einsum("bhnd,hd->bhn", z, a_dst)
    e = f_dst[..., :, None] + f_src[..., None, :]
    e = jnp.where(e >= 0, e, 0.01 * e)
    mask = (adj != 0)[:, None, :, :]
    e = jnp.where(mask, e, -1e30)
    alpha = jax.nn.softmax(e, axis=-1)
    alpha_q = alpha.astype(jnp.bfloat16).astype(f32)
    out = jnp.einsum("bhij,bhjd->bhid", alpha_q, z)
    return out.transpose(0, 2, 1, 3).reshape(B, N, H * D), alpha


if __name__ == "__main__":
    # Shapes consistent with GAT(in_dim, hidden_dim, out_dim, num_heads):
    # per-head out dim = out_dim // num_heads; merged output dim = out_dim.
    B, N = 2, 8
    in_dim, out_dim, num_heads = 16, 32, 4
    head_dim = out_dim // num_heads

    key = jax.random.PRNGKey(0)
    k_h, k_adj, k_w, k_a = jax.random.split(key, 4)

    # node features
    h = jax.random.normal(k_h, (B, N, in_dim), dtype=jnp.float32)

    # deterministic random adjacency (adj[b, dst, src]) with self-loops
    adj = (jax.random.uniform(k_adj, (B, N, N)) < 0.4).astype(jnp.float32)
    adj = jnp.maximum(adj, jnp.eye(N, dtype=jnp.float32)[None])

    # parameter init (shapes from GATLayer.__init__):
    #   fc.weight      : [head_dim, in_dim]   (no bias)
    #   attn_fc.weight : [1, 2*head_dim]      (no bias) -> split src / dst halves
    w = 0.1 * jax.random.normal(k_w, (num_heads, head_dim, in_dim), dtype=jnp.float32)
    a_attn = 0.1 * jax.random.normal(k_a, (num_heads, 2 * head_dim), dtype=jnp.float32)

    # Main path: fused heads, single dst tile, attention returned.
    out, alphas = gat_forward(h, adj, w, a_attn, return_attention=True)
    out = jax.block_until_ready(out)
    alphas = jax.block_until_ready(alphas)

    ref_out, ref_alpha = gat_reference(h, adj, w, a_attn)
    assert out.shape == (B, N, out_dim)
    assert alphas.shape == (B, num_heads, N, N)
    assert jnp.allclose(out, ref_out, atol=1e-2, rtol=1e-2), "output mismatch vs reference"
    assert jnp.allclose(alphas.astype(jnp.float32), ref_alpha, atol=1e-2, rtol=1e-2), \
        "alpha mismatch vs reference"

    # Second config: exercises the 32-aligned dst-tile grid axis and the
    # alpha-less fast path (no O(H*N^2) HBM writeback).
    B2, N2 = 2, 64
    h2 = jax.random.normal(jax.random.PRNGKey(1), (B2, N2, in_dim), dtype=jnp.float32)
    adj2 = (jax.random.uniform(jax.random.PRNGKey(2), (B2, N2, N2)) < 0.2).astype(jnp.float32)
    adj2 = jnp.maximum(adj2, jnp.eye(N2, dtype=jnp.float32)[None])
    out2, _ = gat_forward(h2, adj2, w, a_attn, t_dst=32, return_attention=False)
    out2 = jax.block_until_ready(out2)
    ref_out2, _ = gat_reference(h2, adj2, w, a_attn)
    assert jnp.allclose(out2, ref_out2, atol=1e-2, rtol=1e-2), "tiled output mismatch"

    print("KERNEL_OK")
</pallas_src>

<mosaic_0001>
module attributes {stable_mosaic.version = 11 : i64} {
  func.func @_gat_kernel(%arg0: i32, %arg1: i32, %arg2: memref<1x8x16xbf16, #tpu.memory_space<vmem>>, %arg3: memref<1x8x8xi8, #tpu.memory_space<vmem>>, %arg4: memref<16x32xbf16, #tpu.memory_space<vmem>>, %arg5: memref<4x32xbf16, #tpu.memory_space<vmem>>, %arg6: memref<32x4xbf16, #tpu.memory_space<vmem>>, %arg7: memref<1x8x32xf32, #tpu.memory_space<vmem>>, %arg8: memref<1x4x8x8xbf16, #tpu.memory_space<vmem>>, %arg9: memref<8x32xbf16, #tpu.memory_space<vmem>>, %arg10: memref<4x8xf32, #tpu.memory_space<vmem>>, %arg11: memref<8x4xf32, #tpu.memory_space<vmem>>) attributes {dimension_semantics = [#tpu.dimension_semantics<parallel>, #tpu.dimension_semantics<arbitrary>], iteration_bounds = array<i64: 2, 1>, scalar_prefetch = 0 : i64, scratch_operands = 3 : i64, tpu.core_type = #tpu.core_type<tc>, window_params = [{transform_indices = @transform_0, window_bounds = array<i64: 1, 8, 16>}, {transform_indices = @transform_1, window_bounds = array<i64: 1, 8, 8>}, {pipeline_mode = #tpu.pipeline_mode<synchronous>, transform_indices = @transform_2, window_bounds = array<i64: 16, 32>}, {pipeline_mode = #tpu.pipeline_mode<synchronous>, transform_indices = @transform_3, window_bounds = array<i64: 4, 32>}, {pipeline_mode = #tpu.pipeline_mode<synchronous>, transform_indices = @transform_4, window_bounds = array<i64: 32, 4>}, {transform_indices = @transform_5, window_bounds = array<i64: 1, 8, 32>}, {transform_indices = @transform_6, window_bounds = array<i64: 1, 4, 8, 8>}]} {
    %c0_i32 = arith.constant 0 : i32
    %0 = arith.cmpi eq, %arg1, %c0_i32 : i32
    %1 = arith.extui %0 : i1 to i32
    %c0_i32_0 = arith.constant 0 : i32
    %2 = arith.cmpi ne, %1, %c0_i32_0 : i32
    scf.if %2 {
      %c0_63 = arith.constant 0 : index
      %c0_64 = arith.constant 0 : index
      %c0_65 = arith.constant 0 : index
      %149 = vector.load %arg2[%c0_63, %c0_64, %c0_65] : memref<1x8x16xbf16, #tpu.memory_space<vmem>>, vector<1x8x16xbf16>
      %150 = vector.shape_cast %149 : vector<1x8x16xbf16> to vector<8x16xbf16>
      %c0_66 = arith.constant 0 : index
      %c0_67 = arith.constant 0 : index
      %151 = vector.load %arg4[%c0_66, %c0_67] : memref<16x32xbf16, #tpu.memory_space<vmem>>, vector<16x32xbf16>
      %cst_68 = arith.constant dense<0.000000e+00> : vector<8x32xf32>
      %152 = tpu.matmul %150, %151, %cst_68 {dimension_numbers = #tpu.dot_dimension_numbers<[1], [0], [0], [1], [0, 0, 1, 1], [], []>} : vector<8x16xbf16>, vector<16x32xbf16>, vector<8x32xf32> -> vector<8x32xf32>
      %153 = arith.truncf %152 : vector<8x32xf32> to vector<8x32xbf16>
      %c0_69 = arith.constant 0 : index
      %c0_70 = arith.constant 0 : index
      %154 = vector.load %arg9[%c0_69, %c0_70] : memref<8x32xbf16, #tpu.memory_space<vmem>>, vector<8x32xbf16>
      tpu.vector_store %arg9[%c0_69, %c0_70], %153 {strides = array<i32>} : memref<8x32xbf16, #tpu.memory_space<vmem>>, vector<8x32xbf16>,
      %c0_71 = arith.constant 0 : index
      %c0_72 = arith.constant 0 : index
      %155 = vector.load %arg5[%c0_71, %c0_72] : memref<4x32xbf16, #tpu.memory_space<vmem>>, vector<4x32xbf16>
      %cst_73 = arith.constant dense<0.000000e+00> : vector<4x8xf32>
      %156 = tpu.matmul %155, %153, %cst_73 {dimension_numbers = #tpu.dot_dimension_numbers<[1], [1], [0], [0], [0, 0, 1, 0], [], []>} : vector<4x32xbf16>, vector<8x32xbf16>, vector<4x8xf32> -> vector<4x8xf32>
      %c0_74 = arith.constant 0 : index
      %c0_75 = arith.constant 0 : index
      %157 = vector.load %arg10[%c0_74, %c0_75] : memref<4x8xf32, #tpu.memory_space<vmem>>, vector<4x8xf32>
      tpu.vector_store %arg10[%c0_74, %c0_75], %156 {strides = array<i32>} : memref<4x8xf32, #tpu.memory_space<vmem>>, vector<4x8xf32>,
      %c0_76 = arith.constant 0 : index
      %c0_77 = arith.constant 0 : index
      %158 = vector.load %arg6[%c0_76, %c0_77] : memref<32x4xbf16, #tpu.memory_space<vmem>>, vector<32x4xbf16>
      %cst_78 = arith.constant dense<0.000000e+00> : vector<8x4xf32>
      %159 = tpu.matmul %153, %158, %cst_78 {dimension_numbers = #tpu.dot_dimension_numbers<[1], [0], [0], [1], [0, 0, 1, 1], [], []>} : vector<8x32xbf16>, vector<32x4xbf16>, vector<8x4xf32> -> vector<8x4xf32>
      %c0_79 = arith.constant 0 : index
      %c0_80 = arith.constant 0 : index
      %160 = vector.load %arg11[%c0_79, %c0_80] : memref<8x4xf32, #tpu.memory_space<vmem>>, vector<8x4xf32>
      tpu.vector_store %arg11[%c0_79, %c0_80], %159 {strides = array<i32>} : memref<8x4xf32, #tpu.memory_space<vmem>>, vector<8x4xf32>,
    } else {
    }
    %c8_i32 = arith.constant 8 : i32
    %3 = arith.muli %arg1, %c8_i32 : i32
    %4 = tpu.assume_multiple %3, 8 : i32
    %c0 = arith.constant 0 : index
    %c0_1 = arith.constant 0 : index
    %c0_2 = arith.constant 0 : index
    %5 = vector.load %arg3[%c0, %c0_1, %c0_2] : memref<1x8x8xi8, #tpu.memory_space<vmem>>, vector<1x8x8xi8>
    %6 = vector.shape_cast %5 : vector<1x8x8xi8> to vector<8x8xi8>
    %c0_i8 = arith.constant 0 : i8
    %7 = vector.broadcast %c0_i8 : i8 to vector<8x8xi8>
    %8 = arith.cmpi ne, %6, %7 : vector<8x8xi8>
    %c0_3 = arith.constant 0 : index
    %c0_4 = arith.constant 0 : index
    %9 = vector.load %arg10[%c0_3, %c0_4] : memref<4x8xf32, #tpu.memory_space<vmem>>, vector<1x8xf32>
    %10 = arith.index_cast %4 : i32 to index
    %c0_5 = arith.constant 0 : index
    %11 = vector.load %arg11[%10, %c0_5] : memref<8x4xf32, #tpu.memory_space<vmem>>, vector<8x1xf32>
    %12 = vector.broadcast %11 : vector<8x1xf32> to vector<8x8xf32>
    %13 = vector.broadcast %9 : vector<1x8xf32> to vector<8x8xf32>
    %14 = arith.addf %12, %13 : vector<8x8xf32>
    %cst = arith.constant 0.000000e+00 : f32
    %15 = vector.broadcast %cst : f32 to vector<8x8xf32>
    %16 = arith.cmpf oge, %14, %15 : vector<8x8xf32>
    %cst_6 = arith.constant 0.00999999977 : f32
    %17 = vector.broadcast %cst_6 : f32 to vector<8x8xf32>
    %18 = arith.mulf %17, %14 : vector<8x8xf32>
    %19 = arith.select %16, %14, %18 : vector<8x8xi1>, vector<8x8xf32>
    %cst_7 = arith.constant -1.000000e+30 : f32
    %20 = vector.broadcast %cst_7 : f32 to vector<8x8xf32>
    %21 = arith.select %8, %19, %20 : vector<8x8xi1>, vector<8x8xf32>
    %cst_8 = arith.constant dense<0xFF800000> : vector<8xf32>
    %22 = vector.multi_reduction <maximumf>, %21, %cst_8 [1] : vector<8x8xf32> to vector<8xf32>
    %23 = vector.shape_cast %22 : vector<8xf32> to vector<8x1xf32>
    %24 = vector.broadcast %23 : vector<8x1xf32> to vector<8x8xf32>
    %25 = arith.subf %21, %24 : vector<8x8xf32>
    %26 = math.exp %25 : vector<8x8xf32>
    %cst_9 = arith.constant dense<0.000000e+00> : vector<8xf32>
    %27 = vector.multi_reduction <add>, %26, %cst_9 [1] : vector<8x8xf32> to vector<8xf32>
    %28 = vector.shape_cast %27 : vector<8xf32> to vector<8x1xf32>
    %29 = tpu.reciprocal %28 {approx = true} : vector<8x1xf32> -> vector<8x1xf32>
    %30 = arith.mulf %28, %29 : vector<8x1xf32>
    %cst_10 = arith.constant 2.000000e+00 : f32
    %31 = vector.broadcast %cst_10 : f32 to vector<8x1xf32>
    %32 = arith.subf %31, %30 : vector<8x1xf32>
    %33 = arith.mulf %29, %32 : vector<8x1xf32>
    %34 = vector.broadcast %33 : vector<8x1xf32> to vector<8x8xf32>
    %35 = arith.mulf %26, %34 : vector<8x8xf32>
    %36 = arith.truncf %35 : vector<8x8xf32> to vector<8x8xbf16>
    %c0_11 = arith.constant 0 : index
    %c0_12 = arith.constant 0 : index
    %37 = vector.load %arg9[%c0_11, %c0_12] : memref<8x32xbf16, #tpu.memory_space<vmem>>, vector<8x8xbf16>
    %cst_13 = arith.constant dense<0.000000e+00> : vector<8x8xf32>
    %38 = tpu.matmul %36, %37, %cst_13 {dimension_numbers = #tpu.dot_dimension_numbers<[1], [0], [0], [1], [0, 0, 1, 1], [], []>} : vector<8x8xbf16>, vector<8x8xbf16>, vector<8x8xf32> -> vector<8x8xf32>
    %39 = arith.truncf %35 : vector<8x8xf32> to vector<8x8xbf16>
    %c0_14 = arith.constant 0 : index
    %c0_15 = arith.constant 0 : index
    %c0_16 = arith.constant 0 : index
    %c0_17 = arith.constant 0 : index
    %40 = vector.load %arg8[%c0_14, %c0_15, %c0_16, %c0_17] : memref<1x4x8x8xbf16, #tpu.memory_space<vmem>>, vector<1x1x8x8xbf16>
    %41 = vector.shape_cast %40 : vector<1x1x8x8xbf16> to vector<8x8xbf16>
    %42 = vector.shape_cast %39 : vector<8x8xbf16> to vector<1x1x8x8xbf16>
    tpu.vector_store %arg8[%c0_14, %c0_15, %c0_16, %c0_17], %42 {strides = array<i32>} : memref<1x4x8x8xbf16, #tpu.memory_space<vmem>>, vector<1x1x8x8xbf16>,
    %c1 = arith.constant 1 : index
    %c0_18 = arith.constant 0 : index
    %43 = vector.load %arg10[%c1, %c0_18] : memref<4x8xf32, #tpu.memory_space<vmem>>, vector<1x8xf32>
    %44 = arith.index_cast %4 : i32 to index
    %c1_19 = arith.constant 1 : index
    %45 = vector.load %arg11[%44, %c1_19] : memref<8x4xf32, #tpu.memory_space<vmem>>, vector<8x1xf32>
    %46 = vector.broadcast %45 : vector<8x1xf32> to vector<8x8xf32>
    %47 = vector.broadcast %43 : vector<1x8xf32> to vector<8x8xf32>
    %48 = arith.addf %46, %47 : vector<8x8xf32>
    %cst_20 = arith.constant 0.000000e+00 : f32
    %49 = vector.broadcast %cst_20 : f32 to vector<8x8xf32>
    %50 = arith.cmpf oge, %48, %49 : vector<8x8xf32>
    %cst_21 = arith.constant 0.00999999977 : f32
    %51 = vector.broadcast %cst_21 : f32 to vector<8x8xf32>
    %52 = arith.mulf %51, %48 : vector<8x8xf32>
    %53 = arith.select %50, %48, %52 : vector<8x8xi1>, vector<8x8xf32>
    %cst_22 = arith.constant -1.000000e+30 : f32
    %54 = vector.broadcast %cst_22 : f32 to vector<8x8xf32>
    %55 = arith.select %8, %53, %54 : vector<8x8xi1>, vector<8x8xf32>
    %cst_23 = arith.constant dense<0xFF800000> : vector<8xf32>
    %56 = vector.multi_reduction <maximumf>, %55, %cst_23 [1] : vector<8x8xf32> to vector<8xf32>
    %57 = vector.shape_cast %56 : vector<8xf32> to vector<8x1xf32>
    %58 = vector.broadcast %57 : vector<8x1xf32> to vector<8x8xf32>
    %59 = arith.subf %55, %58 : vector<8x8xf32>
    %60 = math.exp %59 : vector<8x8xf32>
    %cst_24 = arith.constant dense<0.000000e+00> : vector<8xf32>
    %61 = vector.multi_reduction <add>, %60, %cst_24 [1] : vector<8x8xf32> to vector<8xf32>
    %62 = vector.shape_cast %61 : vector<8xf32> to vector<8x1xf32>
    %63 = tpu.reciprocal %62 {approx = true} : vector<8x1xf32> -> vector<8x1xf32>
    %64 = arith.mulf %62, %63 : vector<8x1xf32>
    %cst_25 = arith.constant 2.000000e+00 : f32
    %65 = vector.broadcast %cst_25 : f32 to vector<8x1xf32>
    %66 = arith.subf %65, %64 : vector<8x1xf32>
    %67 = arith.mulf %63, %66 : vector<8x1xf32>
    %68 = vector.broadcast %67 : vector<8x1xf32> to vector<8x8xf32>
    %69 = arith.mulf %60, %68 : vector<8x8xf32>
    %70 = arith.truncf %69 : vector<8x8xf32> to vector<8x8xbf16>
    %c0_26 = arith.constant 0 : index
    %c8 = arith.constant 8 : index
    %71 = vector.load %arg9[%c0_26, %c8] : memref<8x32xbf16, #tpu.memory_space<vmem>>, vector<8x8xbf16>
    %cst_27 = arith.constant dense<0.000000e+00> : vector<8x8xf32>
    %72 = tpu.matmul %70, %71, %cst_27 {dimension_numbers = #tpu.dot_dimension_numbers<[1], [0], [0], [1], [0, 0, 1, 1], [], []>} : vector<8x8xbf16>, vector<8x8xbf16>, vector<8x8xf32> -> vector<8x8xf32>
    %73 = arith.truncf %69 : vector<8x8xf32> to vector<8x8xbf16>
    %c0_28 = arith.constant 0 : index
    %c1_29 = arith.constant 1 : index
    %c0_30 = arith.constant 0 : index
    %c0_31 = arith.constant 0 : index
    %74 = vector.load %arg8[%c0_28, %c1_29, %c0_30, %c0_31] : memref<1x4x8x8xbf16, #tpu.memory_space<vmem>>, vector<1x1x8x8xbf16>
    %75 = vector.shape_cast %74 : vector<1x1x8x8xbf16> to vector<8x8xbf16>
    %76 = vector.shape_cast %73 : vector<8x8xbf16> to vector<1x1x8x8xbf16>
    tpu.vector_store %arg8[%c0_28, %c1_29, %c0_30, %c0_31], %76 {strides = array<i32>} : memref<1x4x8x8xbf16, #tpu.memory_space<vmem>>, vector<1x1x8x8xbf16>,
    %c2 = arith.constant 2 : index
    %c0_32 = arith.constant 0 : index
    %77 = vector.load %arg10[%c2, %c0_32] : memref<4x8xf32, #tpu.memory_space<vmem>>, vector<1x8xf32>
    %78 = arith.index_cast %4 : i32 to index
    %c2_33 = arith.constant 2 : index
    %79 = vector.load %arg11[%78, %c2_33] : memref<8x4xf32, #tpu.memory_space<vmem>>, vector<8x1xf32>
    %80 = vector.broadcast %79 : vector<8x1xf32> to vector<8x8xf32>
    %81 = vector.broadcast %77 : vector<1x8xf32> to vector<8x8xf32>
    %82 = arith.addf %80, %81 : vector<8x8xf32>
    %cst_34 = arith.constant 0.000000e+00 : f32
    %83 = vector.broadcast %cst_34 : f32 to vector<8x8xf32>
    %84 = arith.cmpf oge, %82, %83 : vector<8x8xf32>
    %cst_35 = arith.constant 0.00999999977 : f32
    %85 = vector.broadcast %cst_35 : f32 to vector<8x8xf32>
    %86 = arith.mulf %85, %82 : vector<8x8xf32>
    %87 = arith.select %84, %82, %86 : vector<8x8xi1>, vector<8x8xf32>
    %cst_36 = arith.constant -1.000000e+30 : f32
    %88 = vector.broadcast %cst_36 : f32 to vector<8x8xf32>
    %89 = arith.select %8, %87, %88 : vector<8x8xi1>, vector<8x8xf32>
    %cst_37 = arith.constant dense<0xFF800000> : vector<8xf32>
    %90 = vector.multi_reduction <maximumf>, %89, %cst_37 [1] : vector<8x8xf32> to vector<8xf32>
    %91 = vector.shape_cast %90 : vector<8xf32> to vector<8x1xf32>
    %92 = vector.broadcast %91 : vector<8x1xf32> to vector<8x8xf32>
    %93 = arith.subf %89, %92 : vector<8x8xf32>
    %94 = math.exp %93 : vector<8x8xf32>
    %cst_38 = arith.constant dense<0.000000e+00> : vector<8xf32>
    %95 = vector.multi_reduction <add>, %94, %cst_38 [1] : vector<8x8xf32> to vector<8xf32>
    %96 = vector.shape_cast %95 : vector<8xf32> to vector<8x1xf32>
    %97 = tpu.reciprocal %96 {approx = true} : vector<8x1xf32> -> vector<8x1xf32>
    %98 = arith.mulf %96, %97 : vector<8x1xf32>
    %cst_39 = arith.constant 2.000000e+00 : f32
    %99 = vector.broadcast %cst_39 : f32 to vector<8x1xf32>
    %100 = arith.subf %99, %98 : vector<8x1xf32>
    %101 = arith.mulf %97, %100 : vector<8x1xf32>
    %102 = vector.broadcast %101 : vector<8x1xf32> to vector<8x8xf32>
    %103 = arith.mulf %94, %102 : vector<8x8xf32>
    %104 = arith.truncf %103 : vector<8x8xf32> to vector<8x8xbf16>
    %c0_40 = arith.constant 0 : index
    %c16 = arith.constant 16 : index
    %105 = vector.load %arg9[%c0_40, %c16] : memref<8x32xbf16, #tpu.memory_space<vmem>>, vector<8x8xbf16>
    %cst_41 = arith.constant dense<0.000000e+00> : vector<8x8xf32>
    %106 = tpu.matmul %104, %105, %cst_41 {dimension_numbers = #tpu.dot_dimension_numbers<[1], [0], [0], [1], [0, 0, 1, 1], [], []>} : vector<8x8xbf16>, vector<8x8xbf16>, vector<8x8xf32> -> vector<8x8xf32>
    %107 = arith.truncf %103 : vector<8x8xf32> to vector<8x8xbf16>
    %c0_42 = arith.constant 0 : index
    %c2_43 = arith.constant 2 : index
    %c0_44 = arith.constant 0 : index
    %c0_45 = arith.constant 0 : index
    %108 = vector.load %arg8[%c0_42, %c2_43, %c0_44, %c0_45] : memref<1x4x8x8xbf16, #tpu.memory_space<vmem>>, vector<1x1x8x8xbf16>
    %109 = vector.shape_cast %108 : vector<1x1x8x8xbf16> to vector<8x8xbf16>
    %110 = vector.shape_cast %107 : vector<8x8xbf16> to vector<1x1x8x8xbf16>
    tpu.vector_store %arg8[%c0_42, %c2_43, %c0_44, %c0_45], %110 {strides = array<i32>} : memref<1x4x8x8xbf16, #tpu.memory_space<vmem>>, vector<1x1x8x8xbf16>,
    %c3 = arith.constant 3 : index
    %c0_46 = arith.constant 0 : index
    %111 = vector.load %arg10[%c3, %c0_46] : memref<4x8xf32, #tpu.memory_space<vmem>>, vector<1x8xf32>
    %112 = arith.index_cast %4 : i32 to index
    %c3_47 = arith.constant 3 : index
    %113 = vector.load %arg11[%112, %c3_47] : memref<8x4xf32, #tpu.memory_space<vmem>>, vector<8x1xf32>
    %114 = vector.broadcast %113 : vector<8x1xf32> to vector<8x8xf32>
    %115 = vector.broadcast %111 : vector<1x8xf32> to vector<8x8xf32>
    %116 = arith.addf %114, %115 : vector<8x8xf32>
    %cst_48 = arith.constant 0.000000e+00 : f32
    %117 = vector.broadcast %cst_48 : f32 to vector<8x8xf32>
    %118 = arith.cmpf oge, %116, %117 : vector<8x8xf32>
    %cst_49 = arith.constant 0.00999999977 : f32
    %119 = vector.broadcast %cst_49 : f32 to vector<8x8xf32>
    %120 = arith.mulf %119, %116 : vector<8x8xf32>
    %121 = arith.select %118, %116, %120 : vector<8x8xi1>, vector<8x8xf32>
    %cst_50 = arith.constant -1.000000e+30 : f32
    %122 = vector.broadcast %cst_50 : f32 to vector<8x8xf32>
    %123 = arith.select %8, %121, %122 : vector<8x8xi1>, vector<8x8xf32>
    %cst_51 = arith.constant dense<0xFF800000> : vector<8xf32>
    %124 = vector.multi_reduction <maximumf>, %123, %cst_51 [1] : vector<8x8xf32> to vector<8xf32>
    %125 = vector.shape_cast %124 : vector<8xf32> to vector<8x1xf32>
    %126 = vector.broadcast %125 : vector<8x1xf32> to vector<8x8xf32>
    %127 = arith.subf %123, %126 : vector<8x8xf32>
    %128 = math.exp %127 : vector<8x8xf32>
    %cst_52 = arith.constant dense<0.000000e+00> : vector<8xf32>
    %129 = vector.multi_reduction <add>, %128, %cst_52 [1] : vector<8x8xf32> to vector<8xf32>
    %130 = vector.shape_cast %129 : vector<8xf32> to vector<8x1xf32>
    %131 = tpu.reciprocal %130 {approx = true} : vector<8x1xf32> -> vector<8x1xf32>
    %132 = arith.mulf %130, %131 : vector<8x1xf32>
    %cst_53 = arith.constant 2.000000e+00 : f32
    %133 = vector.broadcast %cst_53 : f32 to vector<8x1xf32>
    %134 = arith.subf %133, %132 : vector<8x1xf32>
    %135 = arith.mulf %131, %134 : vector<8x1xf32>
    %136 = vector.broadcast %135 : vector<8x1xf32> to vector<8x8xf32>
    %137 = arith.mulf %128, %136 : vector<8x8xf32>
    %138 = arith.truncf %137 : vector<8x8xf32> to vector<8x8xbf16>
    %c0_54 = arith.constant 0 : index
    %c24 = arith.constant 24 : index
    %139 = vector.load %arg9[%c0_54, %c24] : memref<8x32xbf16, #tpu.memory_space<vmem>>, vector<8x8xbf16>
    %cst_55 = arith.constant dense<0.000000e+00> : vector<8x8xf32>
    %140 = tpu.matmul %138, %139, %cst_55 {dimension_numbers = #tpu.dot_dimension_numbers<[1], [0], [0], [1], [0, 0, 1, 1], [], []>} : vector<8x8xbf16>, vector<8x8xbf16>, vector<8x8xf32> -> vector<8x8xf32>
    %141 = arith.truncf %137 : vector<8x8xf32> to vector<8x8xbf16>
    %c0_56 = arith.constant 0 : index
    %c3_57 = arith.constant 3 : index
    %c0_58 = arith.constant 0 : index
    %c0_59 = arith.constant 0 : index
    %142 = vector.load %arg8[%c0_56, %c3_57, %c0_58, %c0_59] : memref<1x4x8x8xbf16, #tpu.memory_space<vmem>>, vector<1x1x8x8xbf16>
    %143 = vector.shape_cast %142 : vector<1x1x8x8xbf16> to vector<8x8xbf16>
    %144 = vector.shape_cast %141 : vector<8x8xbf16> to vector<1x1x8x8xbf16>
    tpu.vector_store %arg8[%c0_56, %c3_57, %c0_58, %c0_59], %144 {strides = array<i32>} : memref<1x4x8x8xbf16, #tpu.memory_space<vmem>>, vector<1x1x8x8xbf16>,
    %145 = tpu.concatenate %38, %72, %106, %140 in 1 : vector<8x8xf32>, vector<8x8xf32>, vector<8x8xf32>, vector<8x8xf32> -> vector<8x32xf32>
    %c0_60 = arith.constant 0 : index
    %c0_61 = arith.constant 0 : index
    %c0_62 = arith.constant 0 : index
    %146 = vector.load %arg7[%c0_60, %c0_61, %c0_62] : memref<1x8x32xf32, #tpu.memory_space<vmem>>, vector<1x8x32xf32>
    %147 = vector.shape_cast %146 : vector<1x8x32xf32> to vector<8x32xf32>
    %148 = vector.shape_cast %145 : vector<8x32xf32> to vector<1x8x32xf32>
    tpu.vector_store %arg7[%c0_60, %c0_61, %c0_62], %148 {strides = array<i32>} : memref<1x8x32xf32, #tpu.memory_space<vmem>>, vector<1x8x32xf32>,
    return
  }
  func.func @transform_0(%arg0: i32, %arg1: i32) -> (i32, i32, i32) {
    %c0_i32 = arith.constant 0 : i32
    %c0_i32_0 = arith.constant 0 : i32
    %c0_i32_1 = arith.constant 0 : i32
    return %arg0, %c0_i32, %c0_i32_0 : i32, i32, i32
  }
  func.func @transform_1(%arg0: i32, %arg1: i32) -> (i32, i32, i32) {
    %c0_i32 = arith.constant 0 : i32
    %c0_i32_0 = arith.constant 0 : i32
    return %arg0, %arg1, %c0_i32 : i32, i32, i32
  }
  func.func @transform_2(%arg0: i32, %arg1: i32) -> (i32, i32) {
    %c0_i32 = arith.constant 0 : i32
    %c0_i32_0 = arith.constant 0 : i32
    %c0_i32_1 = arith.constant 0 : i32
    return %c0_i32, %c0_i32_0 : i32, i32
  }
  func.func @transform_3(%arg0: i32, %arg1: i32) -> (i32, i32) {
    %c0_i32 = arith.constant 0 : i32
    %c0_i32_0 = arith.constant 0 : i32
    %c0_i32_1 = arith.constant 0 : i32
    return %c0_i32, %c0_i32_0 : i32, i32
  }
  func.func @transform_4(%arg0: i32, %arg1: i32) -> (i32, i32) {
    %c0_i32 = arith.constant 0 : i32
    %c0_i32_0 = arith.constant 0 : i32
    %c0_i32_1 = arith.constant 0 : i32
    return %c0_i32, %c0_i32_0 : i32, i32
  }
  func.func @transform_5(%arg0: i32, %arg1: i32) -> (i32, i32, i32) {
    %c0_i32 = arith.constant 0 : i32
    %c0_i32_0 = arith.constant 0 : i32
    return %arg0, %arg1, %c0_i32 : i32, i32, i32
  }
  func.func @transform_6(%arg0: i32, %arg1: i32) -> (i32, i32, i32, i32) {
    %c0_i32 = arith.constant 0 : i32
    %c0_i32_0 = arith.constant 0 : i32
    %c0_i32_1 = arith.constant 0 : i32
    return %arg0, %c0_i32, %arg1, %c0_i32_0 : i32, i32, i32, i32
  }
}

</mosaic_0001>

<bundles_post_ra>
// kernel: tpu_custom_call.1
= control target key start
LH: loop header
LB: loop body
LE: loop exit
PB: predicated region body
PF: predicated region fallthrough
CT: control target
= control target key end

     0   :  { %12 = vsyncpa [#allocation6], 0  ;;  %s1673_s0 = inlined_call_operand.vmem [shape: bf16[2,8,16], index: 0, kind: input, shape index: {}]   ;;  %s1674_s1 = inlined_call_operand.hbm [shape: s8[2,8,8], index: 1, kind: input, shape index: {}]   ;;  %s1675_s2 = inlined_call_operand.vmem [shape: bf16[16,32], index: 2, kind: input, shape index: {}]   ;;  %s1676_s3 = inlined_call_operand.vmem [shape: bf16[4,32], index: 3, kind: input, shape index: {}]   ;;  %s1677_s4 = inlined_call_operand.vmem [shape: bf16[32,4], index: 4, kind: input, shape index: {}]   ;;  %s1678_s5 = inlined_call_operand.hbm [shape: f32[2,8,32], index: 5, kind: output, shape index: {0}]   ;;  %s1679_s6 = inlined_call_operand.hbm [shape: bf16[2,4,8,8], index: 6, kind: output, shape index: {1}]  }
   0x1   :  { %14 = vsyncpa [#allocation6 + $0x1], 0 }
   0x2   :  { %15 = vsyncpa [#allocation7], 0 }
   0x3   :  { %17 = vsyncpa [#allocation7 + $0x1], 0 }
   0x4   :  { %18 = vsyncpa [#allocation10], 0 }
   0x5   :  { %20 = vsyncpa [#allocation10 + $0x1], 0  ;;  %s1411_s21 = smov 0   ;;  %s1413_s22 = smov 0  }
   0x6   :  { %s1415_s23 = smov 0   ;;  %s1417_s24 = smov 0  }
   0x7   :  { %s1419_s25 = smov 0   ;;  %s1421_s26 = smov 0  }
   0x8 LB: > { %s1013_s27 = sadd.s32 4294967295, %s1357_s26   ;;  %s1014_s28 = sadd.s32 4294967294, %s1357_s26   ;;  %s1357_s26 = sphi %s1421_s26, %s26_s26   ;;  %s1353_s25 = sphi %s1419_s25, %s1693_s25   ;;  %s1349_s24 = sphi %s1417_s24, %s1692_s24   ;;  %s1345_s23 = sphi %s1415_s23, %s1691_s23   ;;  %s1341_s22 = sphi %s1413_s22, %s1690_s22   ;;  %s1337_s21 = sphi %s1411_s21, %s1689_s21  }
   0x9   : > { %s38_s29 = sadd.s32 1, %s1353_s25  ;;  %s73_s30 = sadd.s32 1, %s1345_s23 }
   0xa   : > { %p40_p0 = scmp.ge.s32.totalorder %s38_s29, 2  ;;  %p80_p1 = scmp.ne.s32.totalorder %s1345_s23, %s1341_s22 }
   0xb   : > { %p81_p2 = scmp.eq.s32.totalorder %s1357_s26, 0  ;;  %p86_p3 = scmp.ne.s32.totalorder %s1341_s22, %s1337_s21 }
   0xc   : > { %s1695_s29 = smov (%p40_p0, %s38_s29), 0  ;;  %p87_p5 = scmp.eq.s32.totalorder %s1013_s27, 0 }
   0xd   : > { %p1452_p4 = por %p81_p2, %p80_p1  ;;  %s68_s8 = ssub.s32 %s1353_s25, %s1695_s29 }
   0xe   : > { %p175_p6 = scmp.eq.s32.totalorder %s1013_s27, 1  ;;  %p71_p7 = scmp.eq.s32.totalorder %s68_s8, 0 }
   0xf   : > { %p1458_p8 = por %p87_p5, %p86_p3  ;;  %p181_p10 = scmp.eq.s32.totalorder %s1014_s28, 1 }
  0x10   : > { %p1462_p9 = por %p175_p6, %p80_p1  ;;  %p1128_p13 = scmp.lt.s32.totalorder %s1357_s26, 2 }
  0x11   : > { %s1467_s11 = scalar_select %p71_p7, %s1345_s23, %s73_s30  }
  0x12   : > { %p1469_p11 = por %p181_p10, %p86_p3  ;;  %s245_s13 = sand.u32 1, %s1345_s23  }
  0x13   : > { %s1017_s14 = sshll.u32 %s245_s13, 1  ;;  %s1018_s15 = sshll.u32 %s1353_s25, 5 }
  0x14   : > { %s1683_s12 = scalar_select %p1469_p11, 1, 0 }
  0x15   : > { %s255_s18 = scalar_lea.hbm %s1674_s1, %s1018_s15  ;;  %s249_s19 = scalar_lea.vmem [#allocation5], %s1017_s14 }
  0x16   : > { %s257_s20 = sshll.u32 %s249_s19, 4  ;;  %p1482_p0 = pnand %p1128_p13, %p1452_p4  ;;  %s258_s20 = int_to_ptr.vmem [resolvable:$true] %s257_s20 }
  0x17   : > { %p1019_p1 = scmp.ge.s32.totalorder %s1357_s26, 1  ;;  %p262_p2 = scmp.lt.s32.totalorder %s1357_s26, 3 }
  0x18   : > { %s246_s28 = scalar_lea.sflag [#allocation6], %s245_s13  ;;  %p1221_p3 = pneg %p1482_p0 }
  0x19   : > { %s1232_s30 = scalar_lea.vmem %s258_s20, 32  ;;  %s1359_s8 = smov [#allocation5]  }
  0x1a   : > { %p1233_p5 = scmp.ne.s32.totalorder %s258_s20, %s1232_s30  ;;  %s1237_s15 = sshll.u32 %s1359_s8, 4  ;;  %s1238_s15 = int_to_ptr.vmem [resolvable:$false] %s1237_s15 }
  0x1b   : > { %s1239_s14 = scalar_lea.vmem %s1238_s15, 64  ;;  %p1240_p10 = scmp.lt.s32.totalorder %s258_s20, %s1238_s15 }
  0x1c   : > { %p1235_p6 = pnand %p1233_p5, %p1221_p3  ;;  %p1241_p12 = scmp.lt.s32.totalorder %s1239_s14, %s1232_s30 }
  0x1e   : > { %p1236_p7 = pneg %p1235_p6  ;;  %p1242_p4 = por %p1241_p12, %p1240_p10 }
  0x20   : > { %p1243_p13 = pnand %p1242_p4, %p1236_p7 }
  0x22   : > { %1246 = shalt.err (!%p1243_p13)
}
  0x23   : > { %1120 = dma.hbm_to_vmem [thread:$0]  (!%p1482_p0), %s255_s18, 32, %s258_s20, %s246_s28  }
  0x24   : > { %p263_p11 = pnand %p1019_p1, %p262_p2 }
  0x25   : > { %s1497_s7 = sand.u32 (!%p263_p11), 1, %s1341_s22  }
  0x26   : > { %266 = sbr.rel (%p263_p11) target bundleno = 1277 (0x4fd), region = 40  ;;  %s1020_s13 = sshll.u32 (!%p263_p11), %s1497_s7, 1 }
  0x27   : > { %s269_s16 = scalar_lea.sflag (!%p263_p11), [#allocation6], %s1497_s7  ;;  %s1501_s17 = scalar_lea.vmem (!%p263_p11), [#allocation5], %s1020_s13 }
  0x2b   : > { %1324 = dma.done.wait (%p1458_p8), %s269_s16, 32  }
  0x2c   : > { %1326 = vsyncadd (%p1458_p8), %s269_s16, 4294967264  ;;  %p310_p12 = scmp.lt.s32.totalorder %s1349_s24, 1  ;;  %v1360_v0 = vmov 0.0   ;;  %vm1361_vm0 = vmmov 0   ;;  %v1197_v1 = vld [vmem:[%s1675_s2] sm:$0xff]   ;;  %vm330_vm1 = vcmask 130048  }
  0x2d   : > { %1067 = vmatprep.subr.bf16.mxu0 %v1360_v0  ;;  %1069 = vmatprep.mubr.msk.bf16.mxu0 %vm1361_vm0, %v1360_v0  ;;  %v1198_v3 = vld [vmem:[%s1677_s4 + $0x8] sm:$0xff]   ;;  %v1199_v4 = vld [vmem:[%s1677_s4] sm:$0xff]   ;;  %vm375_vm2 = vcmask 257024   ;;  %vm378_vm3 = vcmask 261120   ;;  %vm528_vm4 = vcmask 1043456   ;;  %v1362_v14 = vmov 2  }
  0x2e   : > { %s311_s18 = scalar_select %p310_p12, %s1349_s24, 1  ;;  %1073 = vmatprep.subr.bf16.mxu1 %v1360_v0  ;;  %1075 = vmatprep.mubr.msk.bf16.mxu1 %vm1361_vm0, %v1360_v0  ;;  %v377_v11 = vld [vmem:[%s1676_s3] sm:$0x3]  ;;  %v1363_v15 = vmov 0   ;;  %vm483_vm5 = vcmask 31744   ;;  %vm425_vm6 = vcmask 60416  }
  0x2f   : > { %1068 = vmatpush3.bf16.msra.mxu0 %v1197_v1  ;;  %1194 = vset.pattern.permute.xlu1 %v1362_v14  ;;  %v1364_v24 = vmov 3   ;;  %v1365_v25 = vmov 1   ;;  %v486_v27 = vld [vmem:[%s1501_s17] sm:$0x3]  ;;  %vm508_vm10 = vcmask 64512   ;;  %s1366_s17 = smov 112  }
  0x30   : > { %s1023_s19 = sshll.u32 %s311_s18, 2  ;;  %1079 = vmatprep.subr.bf16.mxu0 %v1360_v0  ;;  %1192 = vset.pattern.permute.xlu0 %v1363_v15  ;;  %vm487_vm7 = vnez %v486_v27  ;;  %s1368_s20 = smov 104  }
  0x31   : > { %s313_s27 = scalar_lea.vmem %s1673_s0, %s1023_s19  ;;  %v504_v28 = vsel %vm487_vm7, 16843009, %v1363_v15  ;;  %s1367_s19 = smov 120  }
  0x32   : > { %v321_v2 = vld [vmem:[%s313_s27] sm:$0xf]  ;;  %v505_v30 = vunpack.c.0.s8 %v504_v28  ;;  %s1022_s9 = sshll.u32 %s1497_s7, 4  ;;  %s1369_s28 = smov 8  }
  0x33   : > { %1070 = vmatmul.mubr.msk.bf16.vlgmr.msra.gmra.mxu0 %vm330_vm1, %v321_v2  ;;  %s1571_s27 = scalar_lea.vmem [#allocation9], %s1022_s9  ;;  %s1370_s30 = smov 16  }
  0x34   : > { %1080 = vmatpush3.bf16.msra.mxu0 %v1198_v3  ;;  %1083 = vmatprep.mubr.msk.bf16.mxu0 %vm1361_vm0, %v1360_v0  ;;  %vm1548_vm8 = vcmp.ne.s32.totalorder %v505_v30, 0  ;;  %s1051_s8 = sshll.u32 %s1349_s24, 8  ;;  %s882_s15 = sshll.u32 %s1571_s27, 4  ;;  %s1598_s15 = int_to_ptr.vmem [resolvable:$true] %s882_s15 }
  0x35   : > { %1081 = vmatprep.subr.bf16.mxu0 %v1360_v0  ;;  %s1596_s16 = scalar_lea.hbm %s1679_s6, %s1051_s8  ;;  %s854_s18 = scalar_lea.sflag [#allocation10], %s1497_s7 }
  0x38   : > { %1082 = vmatpush3.bf16.msra.mxu0 %v1199_v4 }
  0x39   : > { %1093 = vmatprep.subr.bf16.mxu0 %v1360_v0 }
  0xf3   : > { %v368_v5 = vpop.f32.mrf.mxu0 }
  0xf4   : > { %v374_v6 = vpack.c.bf16 %v368_v5, %v368_v5 }
  0xf5   : > { %v1071_v7 = vpop.f32.mrf.mxu0 }
  0xf6   : > { %376 = vst.msk [vmem:[#allocation2] sm:$0xf] %vm375_vm2, %v374_v6  ;;  %1084 = vmatmul.mubr.msk.bf16.vlgmr.msra.gmra.mxu0 %vm378_vm3, %v374_v6  ;;  %v383_v8 = vsel %vm378_vm3, %v374_v6, 0 }
  0xf7   : > { %v371_v9 = vpop.f32.mrf.mxu0  ;;  %1074 = vmatpush3.bf16.xpose.msra.mxu1 %v383_v8  ;;  %1095 = vmatprep.mubr.msk.bf16.mxu0 %vm1361_vm0, %v1360_v0 }
  0xf8   : > { %1087 = vmatprep.subr.bf16.mxu1 %v1360_v0 }
  0xf9   : > { %v1072_v10 = vpop.f32.mrf.mxu0 }
  0xfd   : > { %v524_v12 = vld [vmem:[#allocation2] sm:$0xf] }
  0xfe   : > { %1076 = vmatmul.mubr.msk.bf16.vlgmr.msra.gmra.mxu1 %vm378_vm3, %v377_v11  ;;  %v530_v13 = vsel %vm528_vm4, %v524_v12, 0  ;;  %v1200_v11 = vld [vmem:[#allocation2] ss:$0 sps:$4 sm:$0xff]  }
  0xff   : > { %1088 = vmatpush3.bf16.msra.mxu1 %v530_v13  ;;  %1089 = vmatprep.mubr.msk.bf16.mxu1 %vm1361_vm0, %v1360_v0  ;;  %v1201_v12 = vld [vmem:[#allocation2] ss:$0 sps:$4 sm:$0xff]  }
 0x100   : > { %1099 = vmatprep.subr.bf16.mxu1 %v1360_v0 }
 0x1b6   : > { %v477_v16 = vpop.f32.mrf.mxu0 }
 0x1b7   : > { %484 = vst.msk [vmem:[#allocation4] sm:$0xff] %vm483_vm5, %v477_v16 }
 0x1b8   : > { %v1085_v17 = vpop.f32.mrf.mxu0 }
 0x1ba   : > { %v480_v18 = vpop.f32.mrf.mxu0 }
 0x1bb   : > { %v1202_v18 = vld [vmem:[#allocation2] ss:$0 sps:$4 sm:$0xff]  }
 0x1bc   : > { %v1086_v19 = vpop.f32.mrf.mxu0 }
 0x1be   : > { %v660_v20 = vld [vmem:[#allocation4] sm:$0xff]  ;;  %v419_v21 = vpop.f32.mrf.mxu1 }
 0x1bf   : > { %663 = vperm.xlu1 %1194, %v660_v20   ;;  %493 = vperm.xlu0 %1192, %v660_v20   ;;  %426 = vst.msk [vmem:[#allocation3] sm:$0xf] %vm425_vm6, %v419_v21 }
 0x1c0   : > { %v1077_v22 = vpop.f32.mrf.mxu1 }
 0x1c2   : > { %v422_v23 = vpop.f32.mrf.mxu1 }
 0x1c3   : > { %1195 = vset.pattern.permute.xlu1 %v1364_v24  ;;  %1193 = vset.pattern.permute.xlu0 %v1365_v25 }
 0x1c4   : > { %748 = vperm.xlu1 %1195, %v660_v20   ;;  %578 = vperm.xlu0 %1193, %v660_v20   ;;  %v1078_v26 = vpop.f32.mrf.mxu1 }
 0x1c6   : > { %v1030_v29 = vld [vmem:[#allocation3] ss:$0 sm:$0xff]  ;;  %v1036_v31 = vld [vmem:[#allocation3 + $0x2] ss:$0 sm:$0xff]  ;;  %v1040_v36 = vld [vmem:[#allocation3 + $0x3] ss:$0 sm:$0xff] }
 0x1c7   : > { %v1032_v39 = vld [vmem:[#allocation3 + $0x1] ss:$0 sm:$0xff] }
 0x1c8   : > { %1196 = vset.pattern.permute.xlu0 %v1364_v24 }
 0x23a   : > { %v664_v32 = vpop.permute.xlu1 %663  ;;  %v494_v33 = vpop.permute.xlu0 %493 }
 0x23b   : > { %v500_v34 = vadd.f32 %v1030_v29, %v494_v33  ;;  %v670_v35 = vadd.f32 %v1036_v31, %v664_v32 }
 0x23d   : > { %v502_v38 = vmul.f32 0.01, %v500_v34  ;;  %vm501_vm9 = vcmp.ge.f32.partialorder %v500_v34, 0.0  ;;  %v672_v43 = vmul.f32 0.01, %v670_v35  ;;  %vm671_vm11 = vcmp.ge.f32.partialorder %v670_v35, 0.0 }
 0x23f   : > { %v749_v40 = vpop.permute.xlu1 %748  ;;  %v579_v41 = vpop.permute.xlu0 %578  ;;  %v503_v42 = vsel %vm501_vm9, %v500_v34, %v502_v38  ;;  %v673_v52 = vsel %vm671_vm11, %v670_v35, %v672_v43 }
 0x240   : > { %v755_v44 = vadd.f32 %v1040_v36, %v749_v40  ;;  %v585_v45 = vadd.f32 %v1032_v39, %v579_v41  ;;  %v507_v46 = vsel %vm1548_vm8, %v503_v42, -1e+30  ;;  %v674_v57 = vsel %vm1548_vm8, %v673_v52, -1e+30 }
 0x241   : > { %v509_v47 = vsel %vm508_vm10, %v507_v46, -inf  ;;  %v675_v58 = vsel %vm508_vm10, %v674_v57, -inf }
 0x242   : > { %v757_v48 = vmul.f32 0.01, %v755_v44  ;;  %v587_v49 = vmul.f32 0.01, %v585_v45  ;;  %510 = vmax.xlane.f32.xlu1 %v509_v47  ;;  %vm756_vm12 = vcmp.ge.f32.partialorder %v755_v44, 0.0  ;;  %vm586_vm13 = vcmp.ge.f32.partialorder %v585_v45, 0.0 }
 0x244   : > { %v758_v50 = vsel %vm756_vm12, %v755_v44, %v757_v48  ;;  %v588_v51 = vsel %vm586_vm13, %v585_v45, %v587_v49 }
 0x245   : > { %v759_v53 = vsel %vm1548_vm8, %v758_v50, -1e+30  ;;  %v589_v54 = vsel %vm1548_vm8, %v588_v51, -1e+30 }
 0x246   : > { %v760_v55 = vsel %vm508_vm10, %v759_v53, -inf  ;;  %v590_v56 = vsel %vm508_vm10, %v589_v54, -inf }
 0x247   : > { %761 = vmax.xlane.f32.xlu1 %v760_v55  ;;  %591 = vmax.xlane.f32.xlu0 %v590_v56 }
 0x24b   : > { %676 = vmax.xlane.f32.xlu0 %v675_v58 }
 0x2cb   : > { %v511_v59 = vpop.xlane.xlu1 %510 }
 0x2cc   : > { %v512_v60 = vsub.f32 %v507_v46, %v511_v59 }
 0x2ce   : > { %v513_v61 = vmul.f32 1.442695, %v512_v60 }
 0x2d0   : > { %1203 = vpow2.f32 %v513_v61  ;;  %v592_v62 = vpop.xlane.xlu0 %591  ;;  %v762_v13 = vpop.xlane.xlu1 %761 }
 0x2d1   : > { %v593_v63 = vsub.f32 %v589_v54, %v592_v62  ;;  %v763_v14 = vsub.f32 %v759_v53, %v762_v13 }
 0x2d3   : > { %v594_v1 = vmul.f32 1.442695, %v593_v63  ;;  %v764_v15 = vmul.f32 1.442695, %v763_v14 }
 0x2d4   : > { %v677_v2 = vpop.xlane.xlu0 %676 }
 0x2d5   : > { %v678_v3 = vsub.f32 %v674_v57, %v677_v2  ;;  %1205 = vpow2.f32 %v594_v1 }
 0x2d7   : > { %v679_v4 = vmul.f32 1.442695, %v678_v3 }
 0x2d9   : > { %1207 = vpow2.f32 %v679_v4 }
 0x2da   : > { %1209 = vpow2.f32 %v764_v15 }
 0x2dd   : > { %v1204_v5 = vpop.eup %1203 }
 0x2de   : > { %v515_v6 = vsel %vm508_vm10, %v1204_v5, 0.0 }
 0x2df   : > { %516 = vadd.xlane.f32.xlu0 %v515_v6 }
 0x2e2   : > { %v1206_v7 = vpop.eup %1205 }
 0x2e3   : > { %v596_v8 = vsel %vm508_vm10, %v1206_v7, 0.0 }
 0x2e4   : > { %597 = vadd.xlane.f32.xlu1 %v596_v8 }
 0x2e6   : > { %v1208_v9 = vpop.eup %1207 }
 0x2e7   : > { %v681_v10 = vsel %vm508_vm10, %v1208_v9, 0.0  ;;  %v1210_v16 = vpop.eup %1209 }
 0x2e8   : > { %682 = vadd.xlane.f32.xlu0 %v681_v10  ;;  %v766_v17 = vsel %vm508_vm10, %v1210_v16, 0.0 }
 0x2f5   : > { %694 = vrot.lane.b32.xlu1 %v1200_v11, %s1366_s17  ;;  %s1247_s17 = scalar_lea.vmem %s1598_s15, 256 }
 0x2f6   : > { %p1248_p8 = scmp.ne.s32.totalorder %s1598_s15, %s1247_s17 }
 0x2f8   : > { %p1249_p11 = pnand %p1248_p8, %p1462_p9 }
 0x2fa   : > { %p1250_p0 = pneg %p1249_p11 }
 0x2fe   : > { %609 = vrot.lane.b32.xlu0 %v1201_v12, %s1367_s19  ;;  %s1371_s19 = smov [#allocation9]  }
 0x319   : > { %767 = vadd.xlane.f32.xlu1 %v766_v17 }
 0x32a   : > { %779 = vrot.lane.b32.xlu1 %v1202_v18, %s1368_s20  ;;  %s1251_s20 = sshll.u32 %s1371_s19, 4  ;;  %s1252_s20 = int_to_ptr.vmem [resolvable:$false] %s1251_s20 }
 0x32b   : > { %s1253_s9 = scalar_lea.vmem %s1252_s20, 512  ;;  %p1254_p1 = scmp.lt.s32.totalorder %s1598_s15, %s1252_s20 }
 0x32c   : > { %p1255_p2 = scmp.lt.s32.totalorder %s1253_s9, %s1247_s17 }
 0x32e   : > { %p1256_p3 = por %p1255_p2, %p1254_p1 }
 0x330   : > { %p1257_p5 = pnand %p1256_p3, %p1250_p0 }
 0x368   : > { %v517_v19 = vpop.xlane.xlu0 %516 }
 0x369   : > { %1211 = vrcp.f32 %v517_v19 }
 0x36d   : > { %v598_v20 = vpop.xlane.xlu1 %597 }
 0x36e   : > { %1213 = vrcp.f32 %v598_v20 }
 0x371   : > { %v683_v21 = vpop.xlane.xlu0 %682  ;;  %v695_v31 = vpop.permute.xlu1 %694 }
 0x372   : > { %1215 = vrcp.f32 %v683_v21  ;;  %v700_v37 = vsel %vm528_vm4, %v695_v31, 0 }
 0x375   : > { %v610_v22 = vpop.permute.xlu0 %609 }
 0x376   : > { %v1212_v23 = vpop.eup %1211  ;;  %v615_v24 = vsel %vm528_vm4, %v610_v22, 0 }
 0x377   : > { %v519_v25 = vmul.f32 %v1212_v23, %v517_v19  ;;  %1094 = vmatpush3.bf16.msra.mxu0 %v615_v24 }
 0x378   : > { %1105 = vmatprep.subr.bf16.mxu0 %v1360_v0 }
 0x379   : > { %v520_v26 = vsub.f32 2.0, %v519_v25 }
 0x37b   : > { %v521_v27 = vmul.f32 %v1212_v23, %v520_v26  ;;  %v1214_v28 = vpop.eup %1213 }
 0x37c   : > { %v600_v30 = vmul.f32 %v1214_v28, %v598_v20 }
 0x37d   : > { %v522_v29 = vmul.f32 %v1204_v5, %v521_v27 }
 0x37e   : > { %v601_v34 = vsub.f32 2.0, %v600_v30 }
 0x37f   : > { %v1216_v32 = vpop.eup %1215  ;;  %v523_v33 = vpack.c.bf16 %v522_v29, %v522_v29 }
 0x380   : > { %v685_v35 = vmul.f32 %v1216_v32, %v683_v21  ;;  %v602_v36 = vmul.f32 %v1214_v28, %v601_v34 }
 0x381   : > { %573 = vst.msk [vmem:[%s1571_s27] sm:$0xf] %vm425_vm6, %v523_v33  ;;  %1090 = vmatmul.mubr.msk.bf16.vlgmr.msra.gmra.mxu1 %vm508_vm10, %v523_v33 }
 0x382   : > { %v686_v38 = vsub.f32 2.0, %v685_v35  ;;  %1100 = vmatpush3.bf16.msra.mxu1 %v700_v37  ;;  %1101 = vmatprep.mubr.msk.bf16.mxu1 %vm1361_vm0, %v1360_v0  ;;  %v603_v39 = vmul.f32 %v1206_v7, %v602_v36 }
 0x384   : > { %v687_v40 = vmul.f32 %v1216_v32, %v686_v38  ;;  %v604_v41 = vpack.c.bf16 %v603_v39, %v603_v39 }
 0x386   : > { %v688_v42 = vmul.f32 %v1208_v9, %v687_v40  ;;  %1035 = vst.msk [vmem:[%s1571_s27 + $0x4] sm:$0xf] %vm425_vm6, %v604_v41  ;;  %1096 = vmatmul.mubr.msk.bf16.vlgmr.msra.gmra.mxu0 %vm508_vm10, %v604_v41 }
 0x387   : > { %1107 = vmatprep.mubr.msk.bf16.mxu0 %vm1361_vm0, %v1360_v0 }
 0x388   : > { %v689_v43 = vpack.c.bf16 %v688_v42, %v688_v42 }
 0x38a   : > { %1039 = vst.msk [vmem:[%s1571_s27 + $0x8] sm:$0xf] %vm425_vm6, %v689_v43  ;;  %1102 = vmatmul.mubr.msk.bf16.vlgmr.msra.gmra.mxu1 %vm508_vm10, %v689_v43 }
 0x3a2   : > { %v768_v44 = vpop.xlane.xlu1 %767 }
 0x3a3   : > { %1217 = vrcp.f32 %v768_v44 }
 0x3a6   : > { %v780_v45 = vpop.permute.xlu1 %779 }
 0x3a7   : > { %v785_v46 = vsel %vm528_vm4, %v780_v45, 0 }
 0x3a8   : > { %1106 = vmatpush3.bf16.msra.mxu0 %v785_v46 }
 0x3b0   : > { %v1218_v47 = vpop.eup %1217 }
 0x3b1   : > { %v770_v48 = vmul.f32 %v1218_v47, %v768_v44 }
 0x3b3   : > { %v771_v49 = vsub.f32 2.0, %v770_v48 }
 0x3b5   : > { %v772_v50 = vmul.f32 %v1218_v47, %v771_v49 }
 0x3b7   : > { %v773_v51 = vmul.f32 %v1210_v16, %v772_v50 }
 0x3b9   : > { %v774_v52 = vpack.c.bf16 %v773_v51, %v773_v51 }
 0x3bb   : > { %1043 = vst.msk [vmem:[%s1571_s27 + $0xc] sm:$0xf] %vm425_vm6, %v774_v52  ;;  %1108 = vmatmul.mubr.msk.bf16.vlgmr.msra.gmra.mxu0 %vm508_vm10, %v774_v52 }
 0x441   : > { %v566_v0 = vpop.f32.mrf.mxu1 }
 0x443   : > { %v1091_v53 = vpop.f32.mrf.mxu1 }
 0x445   : > { %v569_v54 = vpop.f32.mrf.mxu1 }
 0x446   : > { %v651_v55 = vpop.f32.mrf.mxu0 }
 0x447   : > { %v1092_v56 = vpop.f32.mrf.mxu1  ;;  %830 = vrot.lane.b32.xlu0 %v651_v55, %s1369_s28 }
 0x448   : > { %v1097_v57 = vpop.f32.mrf.mxu0 }
 0x44a   : > { %v736_v58 = vpop.f32.mrf.mxu1  ;;  %v654_v59 = vpop.f32.mrf.mxu0 }
 0x44b   : > { %834 = vrot.lane.b32.xlu1 %v736_v58, %s1370_s30 }
 0x44c   : > { %v1103_v60 = vpop.f32.mrf.mxu1  ;;  %v1098_v61 = vpop.f32.mrf.mxu0 }
 0x44e   : > { %v739_v62 = vpop.f32.mrf.mxu1 }
 0x450   : > { %v1104_v63 = vpop.f32.mrf.mxu1 }
 0x451   : > { %1260 = shalt.err (!%p1257_p5)
}
 0x452   : > { %s1261_s27 = scalar_lea.hbm %s1596_s16, 256  ;;  %s1265_s8 = scalar_lea.hbm %s1679_s6, 512 }
 0x453   : > { %p1262_p6 = scmp.ne.s32.totalorder %s1596_s16, %s1261_s27  ;;  %p1266_p4 = scmp.lt.s32.totalorder %s1596_s16, %s1679_s6 }
 0x454   : > { %p1267_p13 = scmp.lt.s32.totalorder %s1265_s8, %s1261_s27 }
 0x455   : > { %p1263_p7 = pnand %p1262_p6, %p1462_p9 }
 0x456   : > { %p1268_p12 = por %p1267_p13, %p1266_p4 }
 0x457   : > { %p1264_p10 = pneg %p1263_p7 }
 0x459   : > { %p1269_p8 = pnand %p1268_p12, %p1264_p10 }
 0x45b   : > { %1272 = shalt.err (!%p1269_p8)
}
 0x45c   : > { %s1372_s17 = smov 64   ;;  %s1373_s19 = smov 4   ;;  %vm844_vm14 = vcmask 195584  }
 0x45d   : > { %1114 = dma.vmem_to_hbm [thread:$0]  (%p1462_p9), %s1598_s15, 256, %s1596_s16, %s854_s18, %s1372_s17, %s1372_s17, %s1373_s19  }
 0x45e   : > { %s1374_s20 = smov 24   ;;  %s1021_s9 = sshll.u32 %s1497_s7, 3 }
 0x45f   : > { %s1046_s27 = sshll.u32 %s1349_s24, 7  ;;  %s302_s28 = scalar_lea.vmem [#allocation8], %s1021_s9 }
 0x460   : > { %s868_s30 = sshll.u32 %s302_s28, 4  ;;  %s1630_s18 = scalar_lea.hbm %s1678_s5, %s1046_s27  ;;  %s869_s30 = int_to_ptr.vmem [resolvable:$true] %s868_s30 }
 0x461   : > { %s849_s8 = scalar_lea.sflag [#allocation7], %s1497_s7  ;;  %s1273_s14 = scalar_lea.vmem %s869_s30, 128 }
 0x462   : > { %p1274_p11 = scmp.ne.s32.totalorder %s869_s30, %s1273_s14  ;;  %s1375_s24 = smov [#allocation8]  }
 0x463   : > { %s1277_s13 = sshll.u32 %s1375_s24, 4  ;;  %s1278_s13 = int_to_ptr.vmem [resolvable:$false] %s1277_s13 }
 0x464   : > { %p1275_p0 = pnand %p1274_p11, %p1462_p9  ;;  %s1279_s17 = scalar_lea.vmem %s1278_s13, 256 }
 0x465   : > { %p1280_p2 = scmp.lt.s32.totalorder %s869_s30, %s1278_s13  ;;  %p1281_p3 = scmp.lt.s32.totalorder %s1279_s17, %s1273_s14 }
 0x466   : > { %p1276_p1 = pneg %p1275_p0 }
 0x467   : > { %p1282_p5 = por %p1281_p3, %p1280_p2 }
 0x469   : > { %p1283_p6 = pnand %p1282_p5, %p1276_p1 }
 0x47b   : > { %v821_v1 = vpop.f32.mrf.mxu0 }
 0x47c   : > { %838 = vrot.lane.b32.xlu0 %v821_v1, %s1374_s20 }
 0x47d   : > { %v1109_v2 = vpop.f32.mrf.mxu0 }
 0x47f   : > { %v824_v3 = vpop.f32.mrf.mxu0 }
 0x481   : > { %v1110_v4 = vpop.f32.mrf.mxu0 }
 0x4b9   : > { %v831_v5 = vpop.permute.xlu0 %830 }
 0x4ba   : > { %v841_v7 = vsel %vm508_vm10, %v566_v0, %v831_v5 }
 0x4bd   : > { %v835_v6 = vpop.permute.xlu1 %834 }
 0x4be   : > { %v843_v8 = vsel %vm330_vm1, %v841_v7, %v835_v6 }
 0x4ee   : > { %v839_v9 = vpop.permute.xlu0 %838 }
 0x4ef   : > { %v845_v10 = vsel %vm844_vm14, %v843_v8, %v839_v9 }
 0x4f0   : > { %847 = vst.msk [vmem:[%s302_s28] sm:$0xff] %vm378_vm3, %v845_v10 }
 0x4f1   : > { %1286 = shalt.err (!%p1283_p6)
}
 0x4f2   : > { %s1287_s19 = scalar_lea.hbm %s1630_s18, 128  ;;  %s1291_s9 = scalar_lea.hbm %s1678_s5, 256 }
 0x4f3   : > { %p1288_p7 = scmp.ne.s32.totalorder %s1630_s18, %s1287_s19  ;;  %p1292_p13 = scmp.lt.s32.totalorder %s1630_s18, %s1678_s5 }
 0x4f4   : > { %p1293_p12 = scmp.lt.s32.totalorder %s1291_s9, %s1287_s19 }
 0x4f5   : > { %p1289_p10 = pnand %p1288_p7, %p1462_p9 }
 0x4f6   : > { %p1294_p8 = por %p1293_p12, %p1292_p13 }
 0x4f7   : > { %p1290_p4 = pneg %p1289_p10 }
 0x4f9   : > { %p1295_p11 = pnand %p1294_p8, %p1290_p4 }
 0x4fb   : > { %1298 = shalt.err (!%p1295_p11)
}
 0x4fc   : > { %1113 = dma.vmem_to_hbm [thread:$0]  (%p1462_p9), %s869_s30, 128, %s1630_s18, %s849_s8  }
 0x4fd PF: > { %s897_s15 = sand.u32 1, %s1337_s21   ;;  %p1687_p0 = scmp.ne.s32.totalorder %s1683_s12, 0 }
 0x4fe   : > { %p1688_p1 = scmp.ge.s32.totalorder %s1357_s26, 2  ;;  %s898_s16 = scalar_lea.sflag [#allocation7], %s897_s15 }
 0x500   : > { %p1122_p2 = pnand %p1688_p1, %p1687_p0 }
 0x502   : > { %p1123_p3 = pneg %p1122_p2 }
 0x504   : > { %1328 = dma.done.wait (%p1123_p3), %s898_s16, 128  }
 0x505   : > { %1330 = vsyncadd (%p1123_p3), %s898_s16, 4294967168  ;;  %s907_s14 = scalar_lea.sflag [#allocation10], %s897_s15 }
 0x506   : > { %1332 = dma.done.wait (%p1123_p3), %s907_s14, 256  }
 0x507   : > { %1334 = vsyncadd (%p1123_p3), %s907_s14, 4294967040  ;;  %s26_s26 = sadd.s32 1, %s1357_s26   ;;  %s1689_s21 = smov %s1341_s22 }
 0x508   : > { %p23_p5 = scmp.ge.s32.totalorder %s26_s26, 4   ;;  %s1690_s22 = smov %s1345_s23 }
 0x509   : > { %s1691_s23 = smov %s1467_s11  ;;  %s1692_s24 = smov %s1353_s25 }
 0x50a   : > { %s1693_s25 = smov %s1695_s29  ;;  %25 = sbr.rel (!%p23_p5) target bundleno = 8 (0x8), region = 113 }
 0x50f   :  { %912 = vsyncpa [#allocation6], 1 }
 0x510   :  { %914 = vsyncpa [#allocation6 + $0x1], 1 }
 0x511   :  { %915 = vsyncpa [#allocation7], 1 }
 0x512   :  { %917 = vsyncpa [#allocation7 + $0x1], 1 }
 0x513   :  { %918 = vsyncpa [#allocation10], 1 }
 0x514   :  { %920 = vsyncpa [#allocation10 + $0x1], 1 }

</bundles_post_ra>
